<compile_context>
chip_gen: v7x
topology: tpu7x:2x2x1
jax: 0.10.0
libtpu: 0.0.40
codegen_flags: <defaults>
</compile_context>

<pallas_src>
import functools

import jax
import jax.numpy as jnp
from jax.experimental import pallas as pl
from jax.experimental.pallas import tpu as pltpu


def _label_smoothing_ce_kernel(x_ref, tgt_ref, w_ref, out_ref, *,
                               smoothing, inv_temp, num_classes):
    # Scaled logits for this row tile: (TB, C), classes on the lane axis.
    xs = x_ref[...].astype(jnp.float32) * jnp.float32(inv_temp)
    tb, c = xs.shape

    # Row statistics for log-softmax without materializing log_probs:
    #   log_probs = xs - m - lse
    #   nll       = m + lse - xs[target]
    #   smooth    = m + lse - mean(xs, axis=-1)
    m = jnp.max(xs, axis=-1, keepdims=True)                             # (TB,1)
    lse = jnp.log(jnp.sum(jnp.exp(xs - m), axis=-1, keepdims=True))     # (TB,1)
    row_sum = jnp.sum(xs, axis=-1, keepdims=True)                       # (TB,1)

    # Gather x[target] and weights[target] via a boolean mask (no dynamic
    # gather on TPU; cheaper than an f32 one-hot + multiplies).
    tgt = tgt_ref[...]                                                  # (TB,1)
    cols = jax.lax.broadcasted_iota(jnp.int32, (tb, c), 1)
    mask = cols == tgt
    x_t = jnp.sum(jnp.where(mask, xs, 0.0), axis=-1, keepdims=True)     # (TB,1)
    w_t = jnp.sum(jnp.where(mask, w_ref[...], 0.0), axis=-1, keepdims=True)

    mlse = m + lse
    nll_loss = mlse - x_t
    smooth_loss = mlse - row_sum * jnp.float32(1.0 / num_classes)
    loss = (1.0 - smoothing) * nll_loss + smoothing * smooth_loss       # (TB,1)

    out_ref[...] = loss * w_t


def _pick_row_block(n, c):
    """Row tile sized to ~4 MiB of f32 logits per buffer, multiple of 8, <=1024."""
    target_bytes = 4 * 1024 * 1024
    rb = target_bytes // (4 * c)
    rb = max(8, min(1024, (rb // 8) * 8))
    n_pad8 = ((n + 7) // 8) * 8
    return min(rb, max(8, n_pad8))


def label_smoothing_cross_entropy(x, target, weights=None,
                                  smoothing=0.1, temperature=1.0,
                                  row_block=None):
    """loss = mean_n[ ((1-s)*nll_n + s*smooth_n) * weights[target_n] ]"""
    n, c = x.shape
    x = x.astype(jnp.float32)
    target = target.astype(jnp.int32)
    if weights is None:
        weights = jnp.ones((c,), dtype=jnp.float32)   # weights=None branch == plain mean

    if row_block is None:
        row_block = _pick_row_block(n, c)
    row_block = max(8, (row_block // 8) * 8)

    nb = pl.cdiv(n, row_block)
    n_pad = nb * row_block
    if n_pad != n:
        # Zero-pad the batch: padded rows produce finite (ignored) losses.
        x = jnp.pad(x, ((0, n_pad - n), (0, 0)))
        target = jnp.pad(target, (0, n_pad - n))

    tgt2d = target.reshape(n_pad, 1)
    w2d = weights.astype(jnp.float32).reshape(1, c)

    kernel = functools.partial(
        _label_smoothing_ce_kernel,
        smoothing=float(smoothing),
        inv_temp=1.0 / float(temperature),
        num_classes=c,
    )

    losses = pl.pallas_call(
        kernel,
        out_shape=jax.ShapeDtypeStruct((n_pad, 1), jnp.float32),
        grid_spec=pltpu.PrefetchScalarGridSpec(
            num_scalar_prefetch=0,
            grid=(nb,),
            in_specs=[
                pl.BlockSpec((row_block, c), lambda i: (i, 0)),   # logits tile
                pl.BlockSpec((row_block, 1), lambda i: (i, 0)),   # targets tile
                pl.BlockSpec((1, c), lambda i: (0, 0)),           # class weights
            ],
            out_specs=pl.BlockSpec((row_block, 1), lambda i: (i, 0)),
        ),
        compiler_params=pltpu.CompilerParams(
            dimension_semantics=("parallel",),          # independent blocks -> megacore
            vmem_limit_bytes=32 * 1024 * 1024,          # room for large tiles on v5e too
        ),
    )(x, tgt2d, w2d)

    # Tiny final reduction in XLA; padded rows are sliced off.
    return jnp.sum(losses[:n, 0]) / jnp.float32(n)


def _reference(x, target, weights, smoothing=0.1, temperature=1.0):
    log_probs = jax.nn.log_softmax(x / temperature, axis=-1)
    nll = -jnp.take_along_axis(log_probs, target[:, None], axis=-1)[:, 0]
    smooth = -jnp.mean(log_probs, axis=-1)
    loss = (1.0 - smoothing) * nll + smoothing * smooth
    return jnp.mean(loss * weights[target])


if __name__ == "__main__":
    N, C = 16, 32            # batch, num_classes
    smoothing, temperature = 0.1, 1.0

    key = jax.random.PRNGKey(0)
    kx, kt, kw = jax.random.split(key, 3)
    x = jax.random.normal(kx, (N, C), dtype=jnp.float32)
    target = jax.random.randint(kt, (N,), 0, C, dtype=jnp.int32)
    weights = jax.random.uniform(kw, (C,), dtype=jnp.float32, minval=0.5, maxval=1.5)

    loss = jax.block_until_ready(
        label_smoothing_cross_entropy(x, target, weights,
                                      smoothing=smoothing,
                                      temperature=temperature))
    ref = _reference(x, target, weights, smoothing, temperature)
    assert jnp.allclose(loss, ref, rtol=1e-5, atol=1e-5), (loss, ref)

    # Ragged batch (exercises the pad + slice path when N % row_block != 0).
    N2 = 13
    x2 = jax.random.normal(kx, (N2, C), dtype=jnp.float32)
    t2 = jax.random.randint(kt, (N2,), 0, C, dtype=jnp.int32)
    loss2 = jax.block_until_ready(
        label_smoothing_cross_entropy(x2, t2, weights,
                                      smoothing=smoothing,
                                      temperature=temperature))
    ref2 = _reference(x2, t2, weights, smoothing, temperature)
    assert jnp.allclose(loss2, ref2, rtol=1e-5, atol=1e-5), (loss2, ref2)

    print("KERNEL_OK")
</pallas_src>

<mosaic_0001>
module attributes {stable_mosaic.version = 11 : i64} {
  func.func @_label_smoothing_ce_kernel(%arg0: i32, %arg1: memref<16x32xf32, #tpu.memory_space<vmem>>, %arg2: memref<16x1xi32, #tpu.memory_space<vmem>>, %arg3: memref<1x32xf32, #tpu.memory_space<vmem>>, %arg4: memref<16x1xf32, #tpu.memory_space<vmem>>) attributes {dimension_semantics = [#tpu.dimension_semantics<parallel>], iteration_bounds = array<i64: 1>, scalar_prefetch = 0 : i64, scratch_operands = 0 : i64, tpu.core_type = #tpu.core_type<tc>, window_params = [{transform_indices = @transform_0, window_bounds = array<i64: 16, 32>}, {transform_indices = @transform_1, window_bounds = array<i64: 16, 1>}, {pipeline_mode = #tpu.pipeline_mode<synchronous>, transform_indices = @transform_2, window_bounds = array<i64: 1, 32>}, {transform_indices = @transform_3, window_bounds = array<i64: 16, 1>}]} {
    %c0 = arith.constant 0 : index
    %c0_0 = arith.constant 0 : index
    %0 = vector.load %arg1[%c0, %c0_0] : memref<16x32xf32, #tpu.memory_space<vmem>>, vector<16x32xf32>
    %cst = arith.constant 1.000000e+00 : f32
    %1 = vector.broadcast %cst : f32 to vector<16x32xf32>
    %2 = arith.mulf %0, %1 : vector<16x32xf32>
    %cst_1 = arith.constant dense<0xFF800000> : vector<16xf32>
    %3 = vector.multi_reduction <maximumf>, %2, %cst_1 [1] : vector<16x32xf32> to vector<16xf32>
    %4 = vector.shape_cast %3 : vector<16xf32> to vector<16x1xf32>
    %5 = vector.broadcast %4 : vector<16x1xf32> to vector<16x32xf32>
    %6 = arith.subf %2, %5 : vector<16x32xf32>
    %7 = math.exp %6 : vector<16x32xf32>
    %cst_2 = arith.constant dense<0.000000e+00> : vector<16xf32>
    %8 = vector.multi_reduction <add>, %7, %cst_2 [1] : vector<16x32xf32> to vector<16xf32>
    %9 = vector.shape_cast %8 : vector<16xf32> to vector<16x1xf32>
    %10 = math.log %9 : vector<16x1xf32>
    %cst_3 = arith.constant dense<0.000000e+00> : vector<16xf32>
    %11 = vector.multi_reduction <add>, %2, %cst_3 [1] : vector<16x32xf32> to vector<16xf32>
    %12 = vector.shape_cast %11 : vector<16xf32> to vector<16x1xf32>
    %c0_4 = arith.constant 0 : index
    %c0_5 = arith.constant 0 : index
    %13 = vector.load %arg2[%c0_4, %c0_5] : memref<16x1xi32, #tpu.memory_space<vmem>>, vector<16x1xi32>
    %14 = tpu.iota {dimensions = array<i32: 1>} : vector<16x32xi32>
    %15 = vector.broadcast %13 : vector<16x1xi32> to vector<16x32xi32>
    %16 = arith.cmpi eq, %14, %15 : vector<16x32xi32>
    %cst_6 = arith.constant 0.000000e+00 : f32
    %17 = vector.broadcast %cst_6 : f32 to vector<16x32xf32>
    %18 = arith.select %16, %2, %17 : vector<16x32xi1>, vector<16x32xf32>
    %cst_7 = arith.constant dense<0.000000e+00> : vector<16xf32>
    %19 = vector.multi_reduction <add>, %18, %cst_7 [1] : vector<16x32xf32> to vector<16xf32>
    %20 = vector.shape_cast %19 : vector<16xf32> to vector<16x1xf32>
    %c0_8 = arith.constant 0 : index
    %c0_9 = arith.constant 0 : index
    %21 = vector.load %arg3[%c0_8, %c0_9] : memref<1x32xf32, #tpu.memory_space<vmem>>, vector<1x32xf32>
    %cst_10 = arith.constant 0.000000e+00 : f32
    %22 = vector.shape_cast %21 : vector<1x32xf32> to vector<1x32xf32>
    %23 = vector.broadcast %22 : vector<1x32xf32> to vector<16x32xf32>
    %24 = vector.broadcast %cst_10 : f32 to vector<16x32xf32>
    %25 = arith.select %16, %23, %24 : vector<16x32xi1>, vector<16x32xf32>
    %cst_11 = arith.constant dense<0.000000e+00> : vector<16xf32>
    %26 = vector.multi_reduction <add>, %25, %cst_11 [1] : vector<16x32xf32> to vector<16xf32>
    %27 = vector.shape_cast %26 : vector<16xf32> to vector<16x1xf32>
    %28 = arith.addf %4, %10 : vector<16x1xf32>
    %29 = arith.subf %28, %20 : vector<16x1xf32>
    %cst_12 = arith.constant 3.125000e-02 : f32
    %30 = vector.broadcast %cst_12 : f32 to vector<16x1xf32>
    %31 = arith.mulf %12, %30 : vector<16x1xf32>
    %32 = arith.subf %28, %31 : vector<16x1xf32>
    %cst_13 = arith.constant 0.899999976 : f32
    %33 = vector.broadcast %cst_13 : f32 to vector<16x1xf32>
    %34 = arith.mulf %33, %29 : vector<16x1xf32>
    %cst_14 = arith.constant 1.000000e-01 : f32
    %35 = vector.broadcast %cst_14 : f32 to vector<16x1xf32>
    %36 = arith.mulf %35, %32 : vector<16x1xf32>
    %37 = arith.addf %34, %36 : vector<16x1xf32>
    %38 = arith.mulf %37, %27 : vector<16x1xf32>
    %c0_15 = arith.constant 0 : index
    %c0_16 = arith.constant 0 : index
    %39 = vector.load %arg4[%c0_15, %c0_16] : memref<16x1xf32, #tpu.memory_space<vmem>>, vector<16x1xf32>
    tpu.vector_store %arg4[%c0_15, %c0_16], %38 {strides = array<i32>} : memref<16x1xf32, #tpu.memory_space<vmem>>, vector<16x1xf32>,
    return
  }
  func.func @transform_0(%arg0: i32) -> (i32, i32) {
    %c0_i32 = arith.constant 0 : i32
    %c0_i32_0 = arith.constant 0 : i32
    return %arg0, %c0_i32 : i32, i32
  }
  func.func @transform_1(%arg0: i32) -> (i32, i32) {
    %c0_i32 = arith.constant 0 : i32
    %c0_i32_0 = arith.constant 0 : i32
    return %arg0, %c0_i32 : i32, i32
  }
  func.func @transform_2(%arg0: i32) -> (i32, i32) {
    %c0_i32 = arith.constant 0 : i32
    %c0_i32_0 = arith.constant 0 : i32
    %c0_i32_1 = arith.constant 0 : i32
    return %c0_i32, %c0_i32_0 : i32, i32
  }
  func.func @transform_3(%arg0: i32) -> (i32, i32) {
    %c0_i32 = arith.constant 0 : i32
    %c0_i32_0 = arith.constant 0 : i32
    return %arg0, %c0_i32 : i32, i32
  }
}

</mosaic_0001>

<bundles_post_ra>
// kernel: tpu_custom_call.1
= control target key start
LH: loop header
LB: loop body
LE: loop exit
PB: predicated region body
PF: predicated region fallthrough
CT: control target
= control target key end

     0   :  { %vm16_vm0 = vcmask 261120   ;;  %v115_v2 = vmov 0   ;;  %v47_v13 = vlaneseq  ;;  %vm96_vm3 = vcmask 7168   ;;  %s167_s0 = inlined_call_operand.vmem [shape: f32[16,32], index: 0, kind: input, shape index: {}]   ;;  %s168_s1 = inlined_call_operand.vmem [shape: s32[16,1], index: 1, kind: input, shape index: {}]   ;;  %s169_s2 = inlined_call_operand.vmem [shape: f32[1,32], index: 2, kind: input, shape index: {}]   ;;  %s170_s3 = inlined_call_operand.vmem [shape: f32[16,1], index: 3, kind: output, shape index: {}]  }
   0x1   :  { %v14_v0 = vld [vmem:[%s167_s0] sm:$0xff]  ;;  %v15_v1 = vld [vmem:[%s167_s0 + $0x8] sm:$0xff]  ;;  %105 = vset.pattern.permute.xlu1 %v115_v2  ;;  %106 = vset.pattern.permute.xlu0 %v115_v2 }
   0x2   :  { %v45_v3 = vld [vmem:[%s168_s1] sm:$0xff]  ;;  %v17_v4 = vsel %vm16_vm0, %v14_v0, -inf  ;;  %v46_v5 = vld [vmem:[%s168_s1 + $0x8] sm:$0xff]  ;;  %v20_v6 = vsel %vm16_vm0, %v15_v1, -inf  ;;  %v48_v16 = vand.u32 127, %v47_v13  ;;  %v39_v18 = vsel %vm16_vm0, %v14_v0, 0.0 }
   0x3   :  { %50 = vperm.xlu1 %105, %v45_v3   ;;  %18 = vmax.xlane.f32.xlu0 %v17_v4  ;;  %v42_v21 = vsel %vm16_vm0, %v15_v1, 0.0  ;;  %v103_v26 = vld [vmem:[%s169_s2] ss:$0 sm:$0xff] }
   0x7   :  { %53 = vperm.xlu1 %105, %v46_v5   ;;  %21 = vmax.xlane.f32.xlu0 %v20_v6 }
  0x82   :  { %v51_v17 = vpop.permute.xlu1 %50 }
  0x83   :  { %vm55_vm1 = vcmp.eq.s32.totalorder %v48_v16, %v51_v17 }
  0x84   :  { %v57_v23 = vsel %vm55_vm1, %v14_v0, 0.0  ;;  %v72_v28 = vsel %vm55_vm1, %v103_v26, 0.0 }
  0x85   :  { %v59_v24 = vsel %vm16_vm0, %v57_v23, 0.0  ;;  %v74_v29 = vsel %vm16_vm0, %v72_v28, 0.0 }
  0x86   :  { %v54_v22 = vpop.permute.xlu1 %53 }
  0x87   :  { %vm56_vm2 = vcmp.eq.s32.totalorder %v48_v16, %v54_v22 }
  0x88   :  { %v58_v25 = vsel %vm56_vm2, %v15_v1, 0.0  ;;  %v73_v30 = vsel %vm56_vm2, %v103_v26, 0.0 }
  0x89   :  { %v62_v27 = vsel %vm16_vm0, %v58_v25, 0.0  ;;  %v77_v31 = vsel %vm16_vm0, %v73_v30, 0.0 }
  0x90   :  { %v19_v7 = vpop.xlane.xlu0 %18 }
  0x91   :  { %v23_v8 = vsub.f32 %v14_v0, %v19_v7 }
  0x93   :  { %v25_v9 = vmul.f32 1.442695, %v23_v8 }
  0x94   :  { %v22_v10 = vpop.xlane.xlu0 %21 }
  0x95   :  { %107 = vpow2.f32 %v25_v9  ;;  %v24_v11 = vsub.f32 %v15_v1, %v22_v10 }
  0x97   :  { %v27_v12 = vmul.f32 1.442695, %v24_v11 }
  0x99   :  { %109 = vpow2.f32 %v27_v12 }
  0x9f   :  { %v108_v14 = vpop.eup %107 }
  0xa0   :  { %v29_v15 = vsel %vm16_vm0, %v108_v14, 0.0 }
  0xa1   :  { %30 = vadd.xlane.f32.xlu0 %v29_v15 }
  0xa3   :  { %v110_v19 = vpop.eup %109 }
  0xa4   :  { %v32_v20 = vsel %vm16_vm0, %v110_v19, 0.0 }
  0xa5   :  { %40 = vadd.xlane.f32.xlu0 %v39_v18  ;;  %33 = vadd.xlane.f32.xlu1 %v32_v20 }
  0xa9   :  { %43 = vadd.xlane.f32.xlu0 %v42_v21 }
  0xad   :  { %60 = vadd.xlane.f32.xlu0 %v59_v24 }
  0xb1   :  { %63 = vadd.xlane.f32.xlu0 %v62_v27 }
  0xb5   :  { %75 = vadd.xlane.f32.xlu0 %v74_v29 }
  0xb9   :  { %78 = vadd.xlane.f32.xlu0 %v77_v31 }
 0x12e   :  { %v31_v32 = vpop.xlane.xlu0 %30 }
 0x12f   :  { %111 = vlog2.f32 %v31_v32 }
 0x132   :  { %v34_v33 = vpop.xlane.xlu1 %33  ;;  %v41_v34 = vpop.xlane.xlu0 %40 }
 0x133   :  { %113 = vlog2.f32 %v34_v33  ;;  %v84_v40 = vmul.f32 0.03125, %v41_v34 }
 0x136   :  { %v44_v35 = vpop.xlane.xlu0 %43 }
 0x137   :  { %v85_v48 = vmul.f32 0.03125, %v44_v35 }
 0x139   :  { %v112_v36 = vpop.eup %111 }
 0x13a   :  { %v36_v37 = vmul.f32 0.6931472, %v112_v36  ;;  %v61_v38 = vpop.xlane.xlu0 %60 }
 0x13c   :  { %v80_v39 = vadd.f32 %v36_v37, %v19_v7 }
 0x13d   :  { %v114_v41 = vpop.eup %113 }
 0x13e   :  { %v38_v42 = vmul.f32 0.6931472, %v114_v41  ;;  %v86_v43 = vsub.f32 %v80_v39, %v84_v40  ;;  %v82_v44 = vsub.f32 %v80_v39, %v61_v38  ;;  %v64_v45 = vpop.xlane.xlu0 %63 }
 0x140   :  { %v90_v46 = vmul.f32 0.1, %v86_v43  ;;  %v81_v47 = vadd.f32 %v38_v42, %v22_v10  ;;  %v88_v49 = vmul.f32 0.9, %v82_v44 }
 0x142   :  { %v87_v50 = vsub.f32 %v81_v47, %v85_v48  ;;  %v83_v51 = vsub.f32 %v81_v47, %v64_v45  ;;  %v92_v52 = vadd.f32 %v90_v46, %v88_v49  ;;  %v76_v53 = vpop.xlane.xlu0 %75 }
 0x144   :  { %v91_v54 = vmul.f32 0.1, %v87_v50  ;;  %v89_v55 = vmul.f32 0.9, %v83_v51  ;;  %v94_v56 = vmul.f32 %v92_v52, %v76_v53 }
 0x146   :  { %97 = vst.msk [vmem:[%s170_s3] sm:$0xff] %vm96_vm3, %v94_v56  ;;  %v93_v57 = vadd.f32 %v91_v54, %v89_v55  ;;  %v79_v58 = vpop.xlane.xlu0 %78 }
 0x148   :  { %v95_v59 = vmul.f32 %v93_v57, %v79_v58 }
 0x14a   :  { %98 = vst.msk [vmem:[%s170_s3 + $0x8] sm:$0xff] %vm96_vm3, %v95_v59 }

</bundles_post_ra>
